<compile_context>
chip_gen: v7x
topology: tpu7x:2x2x1
jax: 0.10.0
libtpu: 0.0.40
codegen_flags: <defaults>
</compile_context>

<pallas_src>
import functools

import jax
import jax.numpy as jnp
from jax.experimental import pallas as pl
from jax.experimental.pallas import tpu as pltpu


def _round_up(x, m):
    return (x + m - 1) // m * m


# --------------------------------------------------------------------------
# Kernel
# --------------------------------------------------------------------------
def _mlp_kernel(n_layers, *refs):
    """refs = (v, l, w0_v, w0_l, w1, ..., w_{n-1}, biases, out).

    v/l and all weights are bf16; biases are a packed f32 (n_layers, W) array;
    accumulation, bias add and ReLU are f32.
    """
    v_ref, l_ref = refs[0], refs[1]
    w_refs = refs[2:3 + n_layers]          # n_layers + 1 weight refs
    bias_ref = refs[3 + n_layers]
    out_ref = refs[4 + n_layers]

    # ---- layer 0: split-K matmul replaces torch.cat([visual, language], -1) ----
    w0v = w_refs[0][...]
    w0l = w_refs[1][...]
    h0 = w0v.shape[1]
    x = (jnp.dot(v_ref[...], w0v, preferred_element_type=jnp.float32)
         + jnp.dot(l_ref[...], w0l, preferred_element_type=jnp.float32))
    x = x + bias_ref[0:1, :h0]
    if n_layers > 1:
        x = jnp.maximum(x, 0.0)            # ReLU (f32)

    # ---- remaining layers: Linear (+ReLU except last) ----
    for i in range(1, n_layers):
        w = w_refs[i + 1][...]
        d = w.shape[1]
        x = jnp.dot(x.astype(w.dtype), w,
                    preferred_element_type=jnp.float32) + bias_ref[i:i + 1, :d]
        if i < n_layers - 1:
            x = jnp.maximum(x, 0.0)

    out_ref[...] = x.astype(out_ref.dtype)


# --------------------------------------------------------------------------
# One-time param preparation (hoisted out of the per-call path)
# --------------------------------------------------------------------------
def prepare_plan_proposal_params(params, visual_features):
    """Cast weights to bf16, split layer 0 by rows (visual / language), pad only
    the final output dim to a multiple of 128, and pack all biases into one f32
    array.  Returns (weights_tuple, biases) — compute this ONCE and reuse."""
    n_layers = len(params)
    assert n_layers >= 2
    dv = visual_features
    bf16 = jnp.bfloat16
    f32 = jnp.float32

    out_dims = [w.shape[1] for (w, _) in params]
    plan_p = _round_up(out_dims[-1], 128)            # lane-dense final output

    w0 = params[0][0].astype(bf16)
    weights = [w0[:dv], w0[dv:]]                      # split-K layer 0
    for i in range(1, n_layers - 1):
        weights.append(params[i][0].astype(bf16))     # true (hidden, hidden), no pad
    wl = params[-1][0]
    wl_p = (jnp.zeros((wl.shape[0], plan_p), bf16)
            .at[:, :wl.shape[1]].set(wl.astype(bf16)))
    weights.append(wl_p)

    bias_w = _round_up(max(max(out_dims), plan_p), 128)
    biases = jnp.zeros((n_layers, bias_w), f32)
    for i, (_, b) in enumerate(params):
        biases = biases.at[i, :b.shape[0]].set(b.astype(f32))

    return tuple(weights), biases


# --------------------------------------------------------------------------
# Probe: is single-buffering (pl.Buffered(1)) of constant-index blocks supported?
# --------------------------------------------------------------------------
_BUFFERED1_OK = None


def _buffered1_supported():
    global _BUFFERED1_OK
    if _BUFFERED1_OK is None:
        try:
            def _probe(x_ref, o_ref):
                o_ref[...] = x_ref[...]

            x = jnp.zeros((8, 128), jnp.float32)
            out = pl.pallas_call(
                _probe,
                out_shape=jax.ShapeDtypeStruct((8, 128), jnp.float32),
                grid=(1,),
                in_specs=[pl.BlockSpec((8, 128), lambda i: (0, 0),
                                       pipeline_mode=pl.Buffered(1))],
                out_specs=pl.BlockSpec((8, 128), lambda i: (0, 0)),
            )(x)
            jax.block_until_ready(out)
            _BUFFERED1_OK = True
        except Exception:
            _BUFFERED1_OK = False
    return _BUFFERED1_OK


# --------------------------------------------------------------------------
# Forward
# --------------------------------------------------------------------------
def plan_proposal_forward(visual, language, prepared, class_size, category_size):
    """Pallas implementation of PlanProposal.forward.

    `prepared` = prepare_plan_proposal_params(params, visual_features).
    Returns logits reshaped to (batch, class_size, category_size) — the
    contents of the state produced by dist.get_state for a discrete dist.
    """
    weights, biases = prepared
    n_layers = biases.shape[0]
    batch, dv = visual.shape
    _, dl = language.shape
    assert weights[0].shape[0] == dv and weights[1].shape[0] == dl
    plan_features = class_size * category_size
    plan_p = weights[-1].shape[1]
    assert plan_p >= plan_features

    bf16 = jnp.bfloat16

    # ---- batch tile: <=256, multiple of 8; >=2 grid steps when batch allows ----
    b8 = _round_up(max(batch, 1), 8)
    tb = min(256, b8)
    if b8 // tb < 2 and b8 >= 16:
        tb = _round_up((b8 + 1) // 2, 8)      # split so both v7x TCs get work
    b_p = _round_up(batch, tb)
    grid = (b_p // tb,)

    # ---- inputs: bf16 cast only (no lane padding); pad batch rows if needed ----
    v_b = visual.astype(bf16)
    l_b = language.astype(bf16)
    if b_p != batch:
        v_b = jnp.pad(v_b, ((0, b_p - batch), (0, 0)))
        l_b = jnp.pad(l_b, ((0, b_p - batch), (0, 0)))

    use_buf1 = _buffered1_supported()

    def _resident_spec(shape):
        # Constant block index -> stays resident; single-buffer when supported.
        if use_buf1:
            return pl.BlockSpec(shape, lambda i: (0, 0),
                                pipeline_mode=pl.Buffered(1))
        return pl.BlockSpec(shape, lambda i: (0, 0))

    in_specs = [pl.BlockSpec((tb, dv), lambda i: (i, 0)),
                pl.BlockSpec((tb, dl), lambda i: (i, 0))]
    in_specs += [_resident_spec(w.shape) for w in weights]
    in_specs.append(_resident_spec(biases.shape))
    out_spec = pl.BlockSpec((tb, plan_p), lambda i: (i, 0))

    # ---- explicit VMEM budget (headroom over resident weights + tiles) ----
    buf_factor = 1 if use_buf1 else 2
    max_w = max(w.shape[1] for w in weights)
    resident = (sum(int(w.size) for w in weights) * 2 + int(biases.size) * 4) * buf_factor
    per_step = (2 * tb * (dv + dl) * 2        # double-buffered bf16 input tiles
                + 2 * tb * plan_p * 4         # double-buffered f32 output tile
                + 4 * tb * max_w * 4)         # activation working set
    vmem_limit = int(min(128 * 2 ** 20, max(32 * 2 ** 20, 2 * (resident + per_step))))

    out_padded = pl.pallas_call(
        functools.partial(_mlp_kernel, n_layers),
        out_shape=jax.ShapeDtypeStruct((b_p, plan_p), jnp.float32),
        grid=grid,
        in_specs=in_specs,
        out_specs=out_spec,
        compiler_params=pltpu.CompilerParams(
            dimension_semantics=("parallel",),
            vmem_limit_bytes=vmem_limit),
    )(v_b, l_b, *weights, biases)

    # TODO(synk): Distribution.get_state is external; assumed to reshape the
    # flat logits into (batch, class_size, category_size) categorical logits.
    logits = out_padded[:batch, :plan_features].reshape(
        batch, class_size, category_size)
    return logits


# --------------------------------------------------------------------------
# Init + references
# --------------------------------------------------------------------------
def init_params(key, in_size, hidden_size, plan_features, depth):
    """PyTorch nn.Linear-style init: U(-1/sqrt(fan_in), +1/sqrt(fan_in))."""
    sizes = [(in_size, hidden_size)]
    for _ in range(depth):
        sizes.append((hidden_size, hidden_size))
    sizes.append((hidden_size, plan_features))

    params = []
    for fan_in, fan_out in sizes:
        key, kw, kb = jax.random.split(key, 3)
        bound = 1.0 / (fan_in ** 0.5)
        w = jax.random.uniform(kw, (fan_in, fan_out), jnp.float32, -bound, bound)
        b = jax.random.uniform(kb, (fan_out,), jnp.float32, -bound, bound)
        params.append((w, b))
    return params


def reference_forward_f32(visual, language, params):
    """Pure-f32 reference: the original PyTorch PlanProposal math."""
    x = jnp.concatenate([visual, language], axis=-1)
    n = len(params)
    for i, (w, b) in enumerate(params):
        x = jnp.dot(x, w, preferred_element_type=jnp.float32) + b
        if i < n - 1:
            x = jnp.maximum(x, 0.0)
    return x


def reference_forward_bf16(visual, language, params):
    """Reference mirroring the kernel's bf16-operand / f32-accumulate math."""
    x = jnp.concatenate([visual, language], axis=-1)
    n = len(params)
    for i, (w, b) in enumerate(params):
        x = jnp.dot(x.astype(jnp.bfloat16), w.astype(jnp.bfloat16),
                    preferred_element_type=jnp.float32) + b.astype(jnp.float32)
        if i < n - 1:
            x = jnp.maximum(x, 0.0)
    return x


if __name__ == "__main__":
    # Small shapes consistent with the module.
    batch = 8
    visual_features = 32
    language_features = 32
    hidden_size = 32
    depth = 2
    class_size = 8
    category_size = 4
    plan_features = class_size * category_size
    in_size = visual_features + language_features

    key = jax.random.PRNGKey(0)
    k_v, k_l, k_p = jax.random.split(key, 3)
    visual = jax.random.normal(k_v, (batch, visual_features), jnp.float32)
    language = jax.random.normal(k_l, (batch, language_features), jnp.float32)
    params = init_params(k_p, in_size, hidden_size, plan_features, depth)

    # Hoisted, one-time param preparation (would be cached in a real model).
    prepared = prepare_plan_proposal_params(params, visual_features)
    prepared = jax.block_until_ready(prepared)

    out = plan_proposal_forward(visual, language, prepared,
                                class_size, category_size)
    out = jax.block_until_ready(out)
    assert out.shape == (batch, class_size, category_size)

    flat = out.reshape(batch, plan_features)
    ref_bf = reference_forward_bf16(visual, language, params)
    ref_32 = reference_forward_f32(visual, language, params)
    assert jnp.allclose(flat, ref_bf, atol=1e-4, rtol=1e-3), \
        "mismatch vs bf16-matched reference"
    assert jnp.allclose(flat, ref_32, atol=3e-2, rtol=3e-2), \
        "mismatch vs f32 reference"

    print("KERNEL_OK")
</pallas_src>

<mosaic_0001>
module attributes {stable_mosaic.version = 11 : i64} {
  func.func @_probe(%arg0: i32, %arg1: memref<8x128xf32, #tpu.memory_space<vmem>>, %arg2: memref<8x128xf32, #tpu.memory_space<vmem>>) attributes {dimension_semantics = [#tpu.dimension_semantics<arbitrary>], iteration_bounds = array<i64: 1>, scalar_prefetch = 0 : i64, scratch_operands = 0 : i64, tpu.core_type = #tpu.core_type<tc>, window_params = [{pipeline_mode = #tpu.pipeline_mode<synchronous>, transform_indices = @transform_0, window_bounds = array<i64: 8, 128>}, {pipeline_mode = #tpu.pipeline_mode<synchronous>, transform_indices = @transform_1, window_bounds = array<i64: 8, 128>}]} {
    %c0 = arith.constant 0 : index
    %c0_0 = arith.constant 0 : index
    %0 = vector.load %arg1[%c0, %c0_0] : memref<8x128xf32, #tpu.memory_space<vmem>>, vector<8x128xf32>
    %c0_1 = arith.constant 0 : index
    %c0_2 = arith.constant 0 : index
    %1 = vector.load %arg2[%c0_1, %c0_2] : memref<8x128xf32, #tpu.memory_space<vmem>>, vector<8x128xf32>
    tpu.vector_store %arg2[%c0_1, %c0_2], %0 {strides = array<i32>} : memref<8x128xf32, #tpu.memory_space<vmem>>, vector<8x128xf32>,
    return
  }
  func.func @transform_0(%arg0: i32) -> (i32, i32) {
    %c0_i32 = arith.constant 0 : i32
    %c0_i32_0 = arith.constant 0 : i32
    %c0_i32_1 = arith.constant 0 : i32
    return %c0_i32, %c0_i32_0 : i32, i32
  }
  func.func @transform_1(%arg0: i32) -> (i32, i32) {
    %c0_i32 = arith.constant 0 : i32
    %c0_i32_0 = arith.constant 0 : i32
    %c0_i32_1 = arith.constant 0 : i32
    return %c0_i32, %c0_i32_0 : i32, i32
  }
}

module attributes {stable_mosaic.version = 11 : i64} {
  func.func @_mlp_kernel(%arg0: i32, %arg1: memref<8x32xbf16, #tpu.memory_space<vmem>>, %arg2: memref<8x32xbf16, #tpu.memory_space<vmem>>, %arg3: memref<32x32xbf16, #tpu.memory_space<vmem>>, %arg4: memref<32x32xbf16, #tpu.memory_space<vmem>>, %arg5: memref<32x32xbf16, #tpu.memory_space<vmem>>, %arg6: memref<32x32xbf16, #tpu.memory_space<vmem>>, %arg7: memref<32x128xbf16, #tpu.memory_space<vmem>>, %arg8: memref<4x128xf32, #tpu.memory_space<vmem>>, %arg9: memref<8x128xf32, #tpu.memory_space<vmem>>) attributes {dimension_semantics = [#tpu.dimension_semantics<parallel>], iteration_bounds = array<i64: 1>, scalar_prefetch = 0 : i64, scratch_operands = 0 : i64, tpu.core_type = #tpu.core_type<tc>, window_params = [{transform_indices = @transform_0, window_bounds = array<i64: 8, 32>}, {transform_indices = @transform_1, window_bounds = array<i64: 8, 32>}, {pipeline_mode = #tpu.pipeline_mode<synchronous>, transform_indices = @transform_2, window_bounds = array<i64: 32, 32>}, {pipeline_mode = #tpu.pipeline_mode<synchronous>, transform_indices = @transform_3, window_bounds = array<i64: 32, 32>}, {pipeline_mode = #tpu.pipeline_mode<synchronous>, transform_indices = @transform_4, window_bounds = array<i64: 32, 32>}, {pipeline_mode = #tpu.pipeline_mode<synchronous>, transform_indices = @transform_5, window_bounds = array<i64: 32, 32>}, {pipeline_mode = #tpu.pipeline_mode<synchronous>, transform_indices = @transform_6, window_bounds = array<i64: 32, 128>}, {pipeline_mode = #tpu.pipeline_mode<synchronous>, transform_indices = @transform_7, window_bounds = array<i64: 4, 128>}, {transform_indices = @transform_8, window_bounds = array<i64: 8, 128>}]} {
    %c0 = arith.constant 0 : index
    %c0_0 = arith.constant 0 : index
    %0 = vector.load %arg3[%c0, %c0_0] : memref<32x32xbf16, #tpu.memory_space<vmem>>, vector<32x32xbf16>
    %c0_1 = arith.constant 0 : index
    %c0_2 = arith.constant 0 : index
    %1 = vector.load %arg4[%c0_1, %c0_2] : memref<32x32xbf16, #tpu.memory_space<vmem>>, vector<32x32xbf16>
    %c0_3 = arith.constant 0 : index
    %c0_4 = arith.constant 0 : index
    %2 = vector.load %arg1[%c0_3, %c0_4] : memref<8x32xbf16, #tpu.memory_space<vmem>>, vector<8x32xbf16>
    %cst = arith.constant dense<0.000000e+00> : vector<8x32xf32>
    %3 = tpu.matmul %2, %0, %cst {dimension_numbers = #tpu.dot_dimension_numbers<[1], [0], [0], [1], [0, 0, 1, 1], [], []>} : vector<8x32xbf16>, vector<32x32xbf16>, vector<8x32xf32> -> vector<8x32xf32>
    %c0_5 = arith.constant 0 : index
    %c0_6 = arith.constant 0 : index
    %4 = vector.load %arg2[%c0_5, %c0_6] : memref<8x32xbf16, #tpu.memory_space<vmem>>, vector<8x32xbf16>
    %cst_7 = arith.constant dense<0.000000e+00> : vector<8x32xf32>
    %5 = tpu.matmul %4, %1, %cst_7 {dimension_numbers = #tpu.dot_dimension_numbers<[1], [0], [0], [1], [0, 0, 1, 1], [], []>} : vector<8x32xbf16>, vector<32x32xbf16>, vector<8x32xf32> -> vector<8x32xf32>
    %6 = arith.addf %3, %5 : vector<8x32xf32>
    %c0_8 = arith.constant 0 : index
    %c0_9 = arith.constant 0 : index
    %7 = vector.load %arg8[%c0_8, %c0_9] : memref<4x128xf32, #tpu.memory_space<vmem>>, vector<1x32xf32>
    %8 = vector.broadcast %7 : vector<1x32xf32> to vector<8x32xf32>
    %9 = arith.addf %6, %8 : vector<8x32xf32>
    %cst_10 = arith.constant 0.000000e+00 : f32
    %10 = vector.broadcast %cst_10 : f32 to vector<8x32xf32>
    %11 = arith.maximumf %9, %10 : vector<8x32xf32>
    %c0_11 = arith.constant 0 : index
    %c0_12 = arith.constant 0 : index
    %12 = vector.load %arg5[%c0_11, %c0_12] : memref<32x32xbf16, #tpu.memory_space<vmem>>, vector<32x32xbf16>
    %13 = arith.truncf %11 : vector<8x32xf32> to vector<8x32xbf16>
    %cst_13 = arith.constant dense<0.000000e+00> : vector<8x32xf32>
    %14 = tpu.matmul %13, %12, %cst_13 {dimension_numbers = #tpu.dot_dimension_numbers<[1], [0], [0], [1], [0, 0, 1, 1], [], []>} : vector<8x32xbf16>, vector<32x32xbf16>, vector<8x32xf32> -> vector<8x32xf32>
    %c1 = arith.constant 1 : index
    %c0_14 = arith.constant 0 : index
    %15 = vector.load %arg8[%c1, %c0_14] : memref<4x128xf32, #tpu.memory_space<vmem>>, vector<1x32xf32>
    %16 = vector.broadcast %15 : vector<1x32xf32> to vector<8x32xf32>
    %17 = arith.addf %14, %16 : vector<8x32xf32>
    %cst_15 = arith.constant 0.000000e+00 : f32
    %18 = vector.broadcast %cst_15 : f32 to vector<8x32xf32>
    %19 = arith.maximumf %17, %18 : vector<8x32xf32>
    %c0_16 = arith.constant 0 : index
    %c0_17 = arith.constant 0 : index
    %20 = vector.load %arg6[%c0_16, %c0_17] : memref<32x32xbf16, #tpu.memory_space<vmem>>, vector<32x32xbf16>
    %21 = arith.truncf %19 : vector<8x32xf32> to vector<8x32xbf16>
    %cst_18 = arith.constant dense<0.000000e+00> : vector<8x32xf32>
    %22 = tpu.matmul %21, %20, %cst_18 {dimension_numbers = #tpu.dot_dimension_numbers<[1], [0], [0], [1], [0, 0, 1, 1], [], []>} : vector<8x32xbf16>, vector<32x32xbf16>, vector<8x32xf32> -> vector<8x32xf32>
    %c2 = arith.constant 2 : index
    %c0_19 = arith.constant 0 : index
    %23 = vector.load %arg8[%c2, %c0_19] : memref<4x128xf32, #tpu.memory_space<vmem>>, vector<1x32xf32>
    %24 = vector.broadcast %23 : vector<1x32xf32> to vector<8x32xf32>
    %25 = arith.addf %22, %24 : vector<8x32xf32>
    %cst_20 = arith.constant 0.000000e+00 : f32
    %26 = vector.broadcast %cst_20 : f32 to vector<8x32xf32>
    %27 = arith.maximumf %25, %26 : vector<8x32xf32>
    %c0_21 = arith.constant 0 : index
    %c0_22 = arith.constant 0 : index
    %28 = vector.load %arg7[%c0_21, %c0_22] : memref<32x128xbf16, #tpu.memory_space<vmem>>, vector<32x128xbf16>
    %29 = arith.truncf %27 : vector<8x32xf32> to vector<8x32xbf16>
    %cst_23 = arith.constant dense<0.000000e+00> : vector<8x128xf32>
    %30 = tpu.matmul %29, %28, %cst_23 {dimension_numbers = #tpu.dot_dimension_numbers<[1], [0], [0], [1], [0, 0, 1, 1], [], []>} : vector<8x32xbf16>, vector<32x128xbf16>, vector<8x128xf32> -> vector<8x128xf32>
    %c3 = arith.constant 3 : index
    %c0_24 = arith.constant 0 : index
    %31 = vector.load %arg8[%c3, %c0_24] : memref<4x128xf32, #tpu.memory_space<vmem>>, vector<1x128xf32>
    %32 = vector.broadcast %31 : vector<1x128xf32> to vector<8x128xf32>
    %33 = arith.addf %30, %32 : vector<8x128xf32>
    %c0_25 = arith.constant 0 : index
    %c0_26 = arith.constant 0 : index
    %34 = vector.load %arg9[%c0_25, %c0_26] : memref<8x128xf32, #tpu.memory_space<vmem>>, vector<8x128xf32>
    tpu.vector_store %arg9[%c0_25, %c0_26], %33 {strides = array<i32>} : memref<8x128xf32, #tpu.memory_space<vmem>>, vector<8x128xf32>,
    return
  }
  func.func @transform_0(%arg0: i32) -> (i32, i32) {
    %c0_i32 = arith.constant 0 : i32
    %c0_i32_0 = arith.constant 0 : i32
    return %arg0, %c0_i32 : i32, i32
  }
  func.func @transform_1(%arg0: i32) -> (i32, i32) {
    %c0_i32 = arith.constant 0 : i32
    %c0_i32_0 = arith.constant 0 : i32
    return %arg0, %c0_i32 : i32, i32
  }
  func.func @transform_2(%arg0: i32) -> (i32, i32) {
    %c0_i32 = arith.constant 0 : i32
    %c0_i32_0 = arith.constant 0 : i32
    %c0_i32_1 = arith.constant 0 : i32
    return %c0_i32, %c0_i32_0 : i32, i32
  }
  func.func @transform_3(%arg0: i32) -> (i32, i32) {
    %c0_i32 = arith.constant 0 : i32
    %c0_i32_0 = arith.constant 0 : i32
    %c0_i32_1 = arith.constant 0 : i32
    return %c0_i32, %c0_i32_0 : i32, i32
  }
  func.func @transform_4(%arg0: i32) -> (i32, i32) {
    %c0_i32 = arith.constant 0 : i32
    %c0_i32_0 = arith.constant 0 : i32
    %c0_i32_1 = arith.constant 0 : i32
    return %c0_i32, %c0_i32_0 : i32, i32
  }
  func.func @transform_5(%arg0: i32) -> (i32, i32) {
    %c0_i32 = arith.constant 0 : i32
    %c0_i32_0 = arith.constant 0 : i32
    %c0_i32_1 = arith.constant 0 : i32
    return %c0_i32, %c0_i32_0 : i32, i32
  }
  func.func @transform_6(%arg0: i32) -> (i32, i32) {
    %c0_i32 = arith.constant 0 : i32
    %c0_i32_0 = arith.constant 0 : i32
    %c0_i32_1 = arith.constant 0 : i32
    return %c0_i32, %c0_i32_0 : i32, i32
  }
  func.func @transform_7(%arg0: i32) -> (i32, i32) {
    %c0_i32 = arith.constant 0 : i32
    %c0_i32_0 = arith.constant 0 : i32
    %c0_i32_1 = arith.constant 0 : i32
    return %c0_i32, %c0_i32_0 : i32, i32
  }
  func.func @transform_8(%arg0: i32) -> (i32, i32) {
    %c0_i32 = arith.constant 0 : i32
    %c0_i32_0 = arith.constant 0 : i32
    return %arg0, %c0_i32 : i32, i32
  }
}

</mosaic_0001>

<bundles_post_ra>
// kernel: tpu_custom_call.1
= control target key start
LH: loop header
LB: loop body
LE: loop exit
PB: predicated region body
PF: predicated region fallthrough
CT: control target
= control target key end

     0   :  { %6 = vsyncpa [#allocation3], 0  ;;  %s124_s0 = inlined_call_operand.hbm [shape: f32[8,128], index: 0, kind: input, shape index: {}]   ;;  %s125_s1 = inlined_call_operand.hbm [shape: f32[8,128], index: 1, kind: output, shape index: {}]  }
   0x1   :  { %7 = vsyncpa [#allocation4], 0  ;;  %s88_s6 = smov [#allocation2]   ;;  %s40_s10 = scalar_lea.hbm %s124_s0, 128 }
   0x2   :  { %s14_s7 = sshll.u32 %s88_s6, 4  ;;  %p41_p0 = scmp.ne.s32.totalorder %s124_s0, %s40_s10  ;;  %s15_s7 = int_to_ptr.vmem [resolvable:$true] %s14_s7 }
   0x3   :  { %p44_p1 = scmp.lt.u32.totalorder %s40_s10, %s124_s0 }
   0x5   :  { %p46_p2 = pnand %p44_p1, %p41_p0 }
   0x7   :  { %49 = shalt.err (!%p46_p2)
}
   0x8   :  { %s50_s15 = scalar_lea.vmem %s15_s7, 128  ;;  %p55_p4 = scmp.lt.s32.totalorder %s15_s7, %s15_s7 }
   0x9   :  { %p51_p3 = scmp.ne.s32.totalorder %s15_s7, %s50_s15  ;;  %p56_p5 = scmp.lt.s32.totalorder %s50_s15, %s50_s15 }
   0xb   :  { %p57_p6 = por %p56_p5, %p55_p4 }
   0xd   :  { %p58_p7 = pnand %p57_p6, %p51_p3 }
   0xf   :  { %61 = shalt.err (!%p58_p7)
}
  0x10   :  { %17 = dma.hbm_to_vmem [thread:$0]  %s124_s0, 128, %s15_s7, [#allocation3]  }
  0x11   :  { %84 = dma.done.wait [#allocation3], 128  }
  0x12   :  { %85 = vsyncadd [#allocation3], 4294967168  ;;  %s89_s18 = smov [#allocation5]   ;;  %v21_v0 = vld [vmem:[#allocation2] sm:$0xff] }
  0x13   :  { %s29_s19 = sshll.u32 %s89_s18, 4  ;;  %22 = vst [vmem:[#allocation5] sm:$0xff] %v21_v0  ;;  %s30_s19 = int_to_ptr.vmem [resolvable:$true] %s29_s19 }
  0x14   :  { %s62_s20 = scalar_lea.vmem %s30_s19, 128  ;;  %p67_p9 = scmp.lt.s32.totalorder %s30_s19, %s30_s19 }
  0x15   :  { %p63_p8 = scmp.ne.s32.totalorder %s30_s19, %s62_s20  ;;  %p68_p10 = scmp.lt.s32.totalorder %s62_s20, %s62_s20 }
  0x17   :  { %p69_p11 = por %p68_p10, %p67_p9 }
  0x19   :  { %p70_p12 = pnand %p69_p11, %p63_p8 }
  0x1b   :  { %73 = shalt.err (!%p70_p12)
}
  0x1c   :  { %s74_s23 = scalar_lea.hbm %s125_s1, 128 }
  0x1d   :  { %p75_p13 = scmp.ne.s32.totalorder %s125_s1, %s74_s23  ;;  %p78_p0 = scmp.lt.u32.totalorder %s74_s23, %s125_s1 }
  0x1f   :  { %p80_p1 = pnand %p78_p0, %p75_p13 }
  0x21   :  { %83 = shalt.err (!%p80_p1)
}
  0x22   :  { %32 = dma.vmem_to_hbm [thread:$0]  %s30_s19, 128, %s125_s1, [#allocation4]  }
  0x23   :  { %86 = dma.done.wait [#allocation4], 128  }
  0x24   :  { %87 = vsyncadd [#allocation4], 4294967168 }
  0x25   :  { %36 = vsyncpa [#allocation3], 1 }
  0x26   :  { %37 = vsyncpa [#allocation4], 1 }

// kernel: tpu_custom_call.1
= control target key start
LH: loop header
LB: loop body
LE: loop exit
PB: predicated region body
PF: predicated region fallthrough
CT: control target
= control target key end

     0   :  { %13 = vsyncpa [#allocation3], 0  ;;  %s892_s0 = inlined_call_operand.hbm [shape: bf16[8,32], index: 0, kind: input, shape index: {}]   ;;  %s893_s1 = inlined_call_operand.hbm [shape: bf16[8,32], index: 1, kind: input, shape index: {}]   ;;  %s894_s2 = inlined_call_operand.hbm [shape: bf16[32,32], index: 2, kind: input, shape index: {}]   ;;  %s895_s3 = inlined_call_operand.hbm [shape: bf16[32,32], index: 3, kind: input, shape index: {}]   ;;  %s896_s4 = inlined_call_operand.hbm [shape: bf16[32,32], index: 4, kind: input, shape index: {}]   ;;  %s897_s5 = inlined_call_operand.vmem [shape: bf16[32,32], index: 5, kind: input, shape index: {}]   ;;  %s898_s6 = inlined_call_operand.hbm [shape: bf16[32,128], index: 6, kind: input, shape index: {}]   ;;  %s899_s7 = inlined_call_operand.vmem [shape: f32[4,128], index: 7, kind: input, shape index: {}]   ;;  %s900_s8 = inlined_call_operand.hbm [shape: f32[8,128], index: 8, kind: output, shape index: {}]  }
   0x1   :  { %14 = vsyncpa [#allocation6], 0 }
   0x2   :  { %15 = vsyncpa [#allocation9], 0 }
   0x3   :  { %16 = vsyncpa [#allocation12], 0 }
   0x4   :  { %17 = vsyncpa [#allocation4], 0  ;;  %s712_s27 = smov [#allocation5]   ;;  %s548_s9 = scalar_lea.hbm %s893_s1, 64 }
   0x5   :  { %s34_s28 = sshll.u32 %s712_s27, 4  ;;  %p549_p0 = scmp.ne.s32.totalorder %s893_s1, %s548_s9  ;;  %s35_s28 = int_to_ptr.vmem [resolvable:$true] %s34_s28 }
   0x6   :  { %p552_p1 = scmp.lt.u32.totalorder %s548_s9, %s893_s1 }
   0x8   :  { %p554_p2 = pnand %p552_p1, %p549_p0 }
   0xa   :  { %557 = shalt.err (!%p554_p2)
}
   0xb   :  { %s558_s14 = scalar_lea.vmem %s35_s28, 64  ;;  %p563_p4 = scmp.lt.s32.totalorder %s35_s28, %s35_s28 }
   0xc   :  { %p559_p3 = scmp.ne.s32.totalorder %s35_s28, %s558_s14  ;;  %p564_p5 = scmp.lt.s32.totalorder %s558_s14, %s558_s14 }
   0xe   :  { %p565_p6 = por %p564_p5, %p563_p4 }
  0x10   :  { %p566_p7 = pnand %p565_p6, %p559_p3 }
  0x12   :  { %569 = shalt.err (!%p566_p7)
}
  0x13   :  { %37 = dma.hbm_to_vmem [thread:$0]  %s893_s1, 64, %s35_s28, [#allocation6]  }
  0x14   :  { %s713_s17 = smov [#allocation8]   ;;  %s714_s19 = smov [#allocation2]  }
  0x15   :  { %s55_s18 = sshll.u32 %s713_s17, 4  ;;  %s24_s20 = sshll.u32 %s714_s19, 4  ;;  %s56_s18 = int_to_ptr.vmem [resolvable:$true] %s55_s18  ;;  %s25_s20 = int_to_ptr.vmem [resolvable:$true] %s24_s20 }
  0x16   :  { %s570_s23 = scalar_lea.hbm %s895_s3, 256 }
  0x17   :  { %p571_p8 = scmp.ne.s32.totalorder %s895_s3, %s570_s23  ;;  %p574_p9 = scmp.lt.u32.totalorder %s570_s23, %s895_s3 }
  0x19   :  { %p576_p10 = pnand %p574_p9, %p571_p8 }
  0x1b   :  { %579 = shalt.err (!%p576_p10)
}
  0x1c   :  { %s580_s1 = scalar_lea.vmem %s56_s18, 256  ;;  %p585_p12 = scmp.lt.s32.totalorder %s56_s18, %s56_s18 }
  0x1d   :  { %p581_p11 = scmp.ne.s32.totalorder %s56_s18, %s580_s1  ;;  %p586_p13 = scmp.lt.s32.totalorder %s580_s1, %s580_s1 }
  0x1f   :  { %p587_p0 = por %p586_p13, %p585_p12 }
  0x21   :  { %p588_p1 = pnand %p587_p0, %p581_p11 }
  0x23   :  { %591 = shalt.err (!%p588_p1)
}
  0x24   :  { %s715_s28 = smov 64   ;;  %s716_s29 = smov 4  }
  0x25   :  { %61 = dma.hbm_to_vmem [thread:$0]  %s895_s3, 256, %s56_s18, [#allocation9], %s715_s28, %s715_s28, %s716_s29  }
  0x26   :  { %s592_s12 = scalar_lea.hbm %s892_s0, 64 }
  0x27   :  { %p593_p2 = scmp.ne.s32.totalorder %s892_s0, %s592_s12  ;;  %p596_p3 = scmp.lt.u32.totalorder %s592_s12, %s892_s0 }
  0x29   :  { %p598_p4 = pnand %p596_p3, %p593_p2 }
  0x2b   :  { %601 = shalt.err (!%p598_p4)
}
  0x2c   :  { %s602_s17 = scalar_lea.vmem %s25_s20, 64  ;;  %p607_p6 = scmp.lt.s32.totalorder %s25_s20, %s25_s20 }
  0x2d   :  { %p603_p5 = scmp.ne.s32.totalorder %s25_s20, %s602_s17  ;;  %p608_p7 = scmp.lt.s32.totalorder %s602_s17, %s602_s17 }
  0x2f   :  { %p609_p8 = por %p608_p7, %p607_p6 }
  0x31   :  { %p610_p9 = pnand %p609_p8, %p603_p5 }
  0x33   :  { %613 = shalt.err (!%p610_p9)
}
  0x34   :  { %27 = dma.hbm_to_vmem [thread:$0]  %s892_s0, 64, %s25_s20, [#allocation3]  }
  0x35   :  { %s717_s19 = smov [#allocation7]   ;;  %s718_s22 = smov [#allocation10]  }
  0x36   :  { %s43_s21 = sshll.u32 %s717_s19, 4  ;;  %s67_s23 = sshll.u32 %s718_s22, 4  ;;  %s44_s21 = int_to_ptr.vmem [resolvable:$true] %s43_s21  ;;  %s68_s23 = int_to_ptr.vmem [resolvable:$true] %s67_s23 }
  0x37   :  { %s614_s26 = scalar_lea.hbm %s894_s2, 256 }
  0x38   :  { %p615_p10 = scmp.ne.s32.totalorder %s894_s2, %s614_s26  ;;  %p618_p11 = scmp.lt.u32.totalorder %s614_s26, %s894_s2 }
  0x3a   :  { %p620_p12 = pnand %p618_p11, %p615_p10 }
  0x3c   :  { %623 = shalt.err (!%p620_p12)
}
  0x3d   :  { %s624_s0 = scalar_lea.vmem %s44_s21, 256  ;;  %p629_p0 = scmp.lt.s32.totalorder %s44_s21, %s44_s21 }
  0x3e   :  { %p625_p13 = scmp.ne.s32.totalorder %s44_s21, %s624_s0  ;;  %p630_p1 = scmp.lt.s32.totalorder %s624_s0, %s624_s0 }
  0x40   :  { %p631_p2 = por %p630_p1, %p629_p0 }
  0x42   :  { %p632_p3 = pnand %p631_p2, %p625_p13 }
  0x44   :  { %635 = shalt.err (!%p632_p3)
}
  0x45   :  { %49 = dma.hbm_to_vmem [thread:$0]  %s894_s2, 256, %s44_s21, [#allocation6], %s715_s28, %s715_s28, %s716_s29  }
  0x46   :  { %s636_s13 = scalar_lea.hbm %s896_s4, 256 }
  0x47   :  { %p637_p4 = scmp.ne.s32.totalorder %s896_s4, %s636_s13  ;;  %p640_p5 = scmp.lt.u32.totalorder %s636_s13, %s896_s4 }
  0x49   :  { %p642_p6 = pnand %p640_p5, %p637_p4 }
  0x4b   :  { %645 = shalt.err (!%p642_p6)
}
  0x4c   :  { %s646_s3 = scalar_lea.vmem %s68_s23, 256  ;;  %p651_p8 = scmp.lt.s32.totalorder %s68_s23, %s68_s23 }
  0x4d   :  { %p647_p7 = scmp.ne.s32.totalorder %s68_s23, %s646_s3  ;;  %p652_p9 = scmp.lt.s32.totalorder %s646_s3, %s646_s3 }
  0x4f   :  { %p653_p10 = por %p652_p9, %p651_p8 }
  0x51   :  { %p654_p11 = pnand %p653_p10, %p647_p7 }
  0x53   :  { %657 = shalt.err (!%p654_p11)
}
  0x54   :  { %73 = dma.hbm_to_vmem [thread:$0]  %s896_s4, 256, %s68_s23, [#allocation9], %s715_s28, %s715_s28, %s716_s29  }
  0x55   :  { %s719_s19 = smov [#allocation11]   ;;  %s658_s25 = scalar_lea.hbm %s898_s6, 256 }
  0x56   :  { %s81_s21 = sshll.u32 %s719_s19, 4  ;;  %p659_p12 = scmp.ne.s32.totalorder %s898_s6, %s658_s25  ;;  %s82_s21 = int_to_ptr.vmem [resolvable:$true] %s81_s21 }
  0x57   :  { %p662_p13 = scmp.lt.u32.totalorder %s658_s25, %s898_s6 }
  0x59   :  { %p664_p0 = pnand %p662_p13, %p659_p12 }
  0x5b   :  { %667 = shalt.err (!%p664_p0)
}
  0x5c   :  { %s668_s9 = scalar_lea.vmem %s82_s21, 256  ;;  %p673_p2 = scmp.lt.s32.totalorder %s82_s21, %s82_s21 }
  0x5d   :  { %p669_p1 = scmp.ne.s32.totalorder %s82_s21, %s668_s9  ;;  %p674_p3 = scmp.lt.s32.totalorder %s668_s9, %s668_s9 }
  0x5f   :  { %p675_p4 = por %p674_p3, %p673_p2 }
  0x61   :  { %p676_p5 = pnand %p675_p4, %p669_p1 }
  0x63   :  { %679 = shalt.err (!%p676_p5)
}
  0x64   :  { %87 = dma.hbm_to_vmem [thread:$0]  %s898_s6, 256, %s82_s21, [#allocation12], %s715_s28, %s715_s28, %s716_s29  }
  0x65   :  { %702 = dma.done.wait [#allocation3], 64  }
  0x66   :  { %703 = vsyncadd [#allocation3], 4294967232 }
  0x67   :  { %704 = dma.done.wait [#allocation6], 320  }
  0x68   :  { %705 = vsyncadd [#allocation6], 4294966976 }
  0x69   :  { %706 = dma.done.wait [#allocation9], 512  }
  0x6a   :  { %707 = vsyncadd [#allocation9], 4294966784 }
  0x6b   :  { %708 = dma.done.wait [#allocation12], 256  }
  0x6c   :  { %709 = vsyncadd [#allocation12], 4294967040  ;;  %v720_v0 = vmov 0.0   ;;  %vm721_vm0 = vmmov 0   ;;  %v538_v1 = vld [vmem:[#allocation8] sm:$0xff]   ;;  %v539_v2 = vld [vmem:[#allocation7] sm:$0xff]  }
  0x6d   :  { %487 = vmatprep.subr.bf16.mxu0 %v720_v0  ;;  %495 = vmatprep.subr.bf16.mxu1 %v720_v0  ;;  %v540_v3 = vld [vmem:[#allocation8 + $0x8] sm:$0xff]   ;;  %v541_v4 = vld [vmem:[#allocation7 + $0x8] sm:$0xff]   ;;  %vm131_vm1 = vcmask 261120   ;;  %v542_v7 = vld [vmem:[#allocation10] sm:$0xff]   ;;  %s722_s16 = smov [#allocation13]  }
  0x6e   :  { %491 = vmatprep.mubr.msk.bf16.mxu0 %vm721_vm0, %v720_v0  ;;  %499 = vmatprep.mubr.msk.bf16.mxu1 %vm721_vm0, %v720_v0  ;;  %v118_v5 = vld [vmem:[#allocation5] sm:$0xf]  ;;  %v117_v6 = vld [vmem:[#allocation2] sm:$0xf]  ;;  %v543_v8 = vld [vmem:[#allocation10 + $0x8] sm:$0xff]   ;;  %s441_s17 = sshll.u32 %s722_s16, 4  ;;  %s442_s17 = int_to_ptr.vmem [resolvable:$true] %s441_s17 }
  0x6f   :  { %488 = vmatpush3.bf16.msra.mxu0 %v538_v1  ;;  %496 = vmatpush3.bf16.msra.mxu1 %v539_v2  ;;  %v544_v9 = vld [vmem:[%s897_s5] sm:$0xff]   ;;  %v545_v23 = vld [vmem:[%s897_s5 + $0x8] sm:$0xff]   ;;  %v547_v33 = vld [vmem:[#allocation11 + $0x8] sm:$0xff]   ;;  %s680_s3 = scalar_lea.vmem %s442_s17, 128  ;;  %p685_p7 = scmp.lt.s32.totalorder %s442_s17, %s442_s17 }
  0x70   :  { %489 = vmatprep.subr.bf16.mxu0 %v720_v0  ;;  %497 = vmatprep.subr.bf16.mxu1 %v720_v0  ;;  %v459_v12 = vld [vmem:[%s899_s7] ss:$0 sm:$0xff]  ;;  %v546_v24 = vld [vmem:[#allocation11] sm:$0xff]   ;;  %v460_v25 = vld [vmem:[%s899_s7 + $0x1] ss:$0 sm:$0xff]  ;;  %p681_p6 = scmp.ne.s32.totalorder %s442_s17, %s680_s3  ;;  %p686_p8 = scmp.lt.s32.totalorder %s680_s3, %s680_s3 }
  0x71   :  { %v464_v34 = vld [vmem:[%s899_s7 + $0x2] ss:$0 sm:$0xff]  ;;  %v468_v42 = vld [vmem:[%s899_s7 + $0x3] ss:$0 sm:$0xff] }
  0x72   :  { %p687_p9 = por %p686_p8, %p685_p7 }
  0x73   :  { %490 = vmatpush3.bf16.msra.mxu0 %v540_v3  ;;  %498 = vmatpush3.bf16.msra.mxu1 %v541_v4 }
  0x74   :  { %503 = vmatprep.subr.bf16.mxu0 %v720_v0  ;;  %511 = vmatprep.subr.bf16.mxu1 %v720_v0  ;;  %p688_p10 = pnand %p687_p9, %p681_p6 }
  0x76   :  { %492 = vmatmul.mubr.msk.bf16.vlgmr.msra.gmra.mrb[0].mxu0 %vm131_vm1, %v118_v5  ;;  %500 = vmatmul.mubr.msk.bf16.vlgmr.msra.gmra.mrb[0].mxu1 %vm131_vm1, %v117_v6 }
  0x77   :  { %507 = vmatprep.mubr.msk.bf16.mxu0 %vm721_vm0, %v720_v0  ;;  %515 = vmatprep.mubr.msk.bf16.mxu1 %vm721_vm0, %v720_v0 }
  0x78   :  { %504 = vmatpush3.bf16.msra.mxu0 %v542_v7  ;;  %512 = vmatpush3.bf16.msra.mxu1 %v544_v9 }
  0x79   :  { %505 = vmatprep.subr.bf16.mxu0 %v720_v0  ;;  %513 = vmatprep.subr.bf16.mxu1 %v720_v0 }
  0x7c   :  { %506 = vmatpush3.bf16.msra.mxu0 %v543_v8  ;;  %514 = vmatpush3.bf16.msra.mxu1 %v545_v23 }
  0x7d   :  { %519 = vmatprep.subr.bf16.mxu0 %v720_v0 }
 0x149   :  { %v169_v10 = vpop.f32.mrb[0].mxu0  ;;  %v224_v11 = vpop.f32.mrb[0].mxu1 }
 0x14a   :  { %v493_v13 = vpop.f32.mrb[1].mxu0  ;;  %v225_v14 = vadd.f32 %v224_v11, %v169_v10  ;;  %v501_v15 = vpop.f32.mrb[1].mxu1 }
 0x14b   :  { %v172_v16 = vpop.f32.mrb[2].mxu0  ;;  %v227_v17 = vpop.f32.mrb[2].mxu1 }
 0x14c   :  { %v494_v18 = vpop.f32.mrb[3].mxu0  ;;  %v235_v19 = vadd.f32 %v459_v12, %v225_v14  ;;  %v502_v20 = vpop.f32.mrb[3].mxu1 }
 0x14e   :  { %v236_v21 = vmax.f32 %v235_v19, 0.0 }
 0x150   :  { %v241_v22 = vpack.c.bf16 %v236_v21, %v236_v21 }
 0x152   :  { %508 = vmatmul.mubr.msk.bf16.vlgmr.msra.gmra.mrb[4].mxu0 %vm131_vm1, %v241_v22 }
 0x153   :  { %523 = vmatprep.mubr.msk.bf16.mxu0 %vm721_vm0, %v720_v0  ;;  %520 = vmatpush3.bf16.msra.mxu0 %v546_v24 }
 0x154   :  { %521 = vmatprep.subr.bf16.mxu0 %v720_v0 }
 0x157   :  { %522 = vmatpush3.bf16.msra.mxu0 %v547_v33 }
 0x225   :  { %v296_v26 = vpop.f32.mrb[4].mxu0 }
 0x226   :  { %v297_v27 = vadd.f32 %v460_v25, %v296_v26  ;;  %v509_v28 = vpop.f32.mrb[5].mxu0 }
 0x227   :  { %v299_v29 = vpop.f32.mrb[6].mxu0 }
 0x228   :  { %v302_v30 = vmax.f32 %v297_v27, 0.0  ;;  %v510_v31 = vpop.f32.mrb[7].mxu0 }
 0x22a   :  { %v307_v32 = vpack.c.bf16 %v302_v30, %v302_v30 }
 0x22c   :  { %516 = vmatmul.mubr.msk.bf16.vlgmr.msra.gmra.mrb[4].mxu1 %vm131_vm1, %v307_v32 }
 0x2ff   :  { %v362_v35 = vpop.f32.mrb[4].mxu1 }
 0x300   :  { %v363_v36 = vadd.f32 %v464_v34, %v362_v35  ;;  %v517_v37 = vpop.f32.mrb[5].mxu1 }
 0x301   :  { %v365_v38 = vpop.f32.mrb[6].mxu1 }
 0x302   :  { %v368_v39 = vmax.f32 %v363_v36, 0.0  ;;  %v518_v40 = vpop.f32.mrb[7].mxu1 }
 0x304   :  { %v373_v41 = vpack.c.bf16 %v368_v39, %v368_v39 }
 0x306   :  { %524 = vmatmul.mubr.msk.bf16.vlgmr.msra.gmra.mrb[8].mxu0 %vm131_vm1, %v373_v41 }
 0x3d9   :  { %v428_v43 = vpop.f32.mrb[8].mxu0 }
 0x3da   :  { %v429_v44 = vadd.f32 %v468_v42, %v428_v43  ;;  %v525_v45 = vpop.f32.mrb[9].mxu0 }
 0x3db   :  { %v431_v46 = vpop.f32.mrb[10].mxu0 }
 0x3dc   :  { %434 = vst [vmem:[#allocation13] sm:$0xff] %v429_v44  ;;  %v526_v47 = vpop.f32.mrb[11].mxu0 }
 0x3dd   :  { %691 = shalt.err (!%p688_p10)
}
 0x3de   :  { %s692_s7 = scalar_lea.hbm %s900_s8, 128 }
 0x3df   :  { %p693_p11 = scmp.ne.s32.totalorder %s900_s8, %s692_s7  ;;  %p696_p12 = scmp.lt.u32.totalorder %s692_s7, %s900_s8 }
 0x3e1   :  { %p698_p13 = pnand %p696_p12, %p693_p11 }
 0x3e3   :  { %701 = shalt.err (!%p698_p13)
}
 0x3e4   :  { %444 = dma.vmem_to_hbm [thread:$0]  %s442_s17, 128, %s900_s8, [#allocation4]  }
 0x3e5   :  { %710 = dma.done.wait [#allocation4], 128  }
 0x3e6   :  { %711 = vsyncadd [#allocation4], 4294967168 }
 0x3e7   :  { %448 = vsyncpa [#allocation3], 1 }
 0x3e8   :  { %449 = vsyncpa [#allocation6], 1 }
 0x3e9   :  { %450 = vsyncpa [#allocation9], 1 }
 0x3ea   :  { %451 = vsyncpa [#allocation12], 1 }
 0x3eb   :  { %452 = vsyncpa [#allocation4], 1 }

</bundles_post_ra>
